<compile_context>
chip_gen: v5e
topology: v5e:2x2
jax: 0.10.0
libtpu: 0.0.40
codegen_flags: <defaults>
</compile_context>

<pallas_src>
import functools

import jax
import jax.numpy as jnp
from jax.experimental import pallas as pl
from jax.experimental.pallas import tpu as pltpu


# ---------------------------------------------------------------------------
# Chip-generation heuristics (safe fallbacks if detection fails)
# ---------------------------------------------------------------------------
def _device_kind() -> str:
    try:
        return jax.devices()[0].device_kind.lower()
    except Exception:
        return ""


def _default_config():
    kind = _device_kind()
    if "v5" in kind:
        # v5e: no bf16 VPU/EUP -> f32 tanh; 4x128 MXU saturates amortization
        # earlier, so cap the batch tile at 2048 lanes.
        return dict(tanh_dtype=jnp.float32, max_tile=2048, min_steps=1)
    if "v7" in kind:
        # v7x: 2 TensorCores -> guarantee >= 2 parallel grid steps for
        # medium/large batches; bf16 EUP available.
        return dict(tanh_dtype=jnp.bfloat16, max_tile=4096, min_steps=2)
    if "v6" in kind:
        return dict(tanh_dtype=jnp.bfloat16, max_tile=4096, min_steps=1)
    # Unknown chip: conservative settings.
    return dict(tanh_dtype=jnp.float32, max_tile=2048, min_steps=1)


# ---------------------------------------------------------------------------
# Fused 4-layer MLP kernel (3x tanh-Linear + output Linear), batch on lanes.
# ---------------------------------------------------------------------------
def _policy_mlp_kernel(xT_ref, w1_ref, b1_ref, w2_ref, b2_ref,
                       w3_ref, b3_ref, w4_ref, b4_ref, meanT_ref,
                       *, n_chunks, tanh_dtype):
    operand_dtype = w1_ref.dtype
    # Weights/biases are VMEM-resident across the whole grid (constant index
    # maps); load once and reuse across lane sub-chunks.
    w1, b1 = w1_ref[...], b1_ref[...]
    w2, b2 = w2_ref[...], b2_ref[...]
    w3, b3 = w3_ref[...], b3_ref[...]
    w4, b4 = w4_ref[...], b4_ref[...]

    tm = xT_ref.shape[1]
    cw = tm // n_chunks                         # chunk width (multiple of 128)

    def layer(w, b, a):
        pre = jnp.dot(w, a, preferred_element_type=jnp.float32) + b  # f32 acc
        return jnp.tanh(pre.astype(tanh_dtype)).astype(operand_dtype)

    # Independent lane sub-chunks -> ILP across MXU / EUP / VPU slots.
    for c in range(n_chunks):
        sl = slice(c * cw, (c + 1) * cw)        # static, lane-aligned slice
        h = layer(w1, b1, xT_ref[:, sl])        # (H, cw)
        h = layer(w2, b2, h)
        h = layer(w3, b3, h)
        meanT_ref[:, sl] = (
            jnp.dot(w4, h, preferred_element_type=jnp.float32) + b4)  # (A, cw)


# ---------------------------------------------------------------------------
# Batch tiling: pad to 128 only; biggest tile (<= max_tile) dividing n_pad.
# ---------------------------------------------------------------------------
def _choose_batch_tiling(n, max_tile, min_steps):
    n_pad = ((n + 127) // 128) * 128
    units = n_pad // 128
    cap = max(1, min(units, max_tile // 128))
    if min_steps > 1 and n_pad >= 256:          # v7x: feed both TensorCores
        cap = min(cap, max(1, units // min_steps))
    t_units = 1
    for d in range(cap, 0, -1):                 # largest divisor of `units`
        if units % d == 0:
            t_units = d
            break
    return n_pad, t_units * 128


# ---------------------------------------------------------------------------
# Wrappers
# ---------------------------------------------------------------------------
def _forward_xla(x, params):
    """Plain-XLA f32 forward (tiny rollout batches; also the loose reference)."""
    f32 = lambda a: a.astype(jnp.float32)
    h = jnp.tanh(x.astype(jnp.float32) @ f32(params["w1"]).T + f32(params["b1"]).T)
    h = jnp.tanh(h @ f32(params["w2"]).T + f32(params["b2"]).T)
    h = jnp.tanh(h @ f32(params["w3"]).T + f32(params["b3"]).T)
    return h @ f32(params["w4"]).T + f32(params["b4"]).T


def _forward_reference(x, params, operand_dtype, tanh_dtype):
    """Pure-JAX mirror of the exact kernel dtype recipe (for tests)."""
    od = operand_dtype

    def layer(w, b, a):
        pre = jnp.dot(a.astype(od), w.astype(od).T,
                      preferred_element_type=jnp.float32) + b.astype(jnp.float32).T
        return jnp.tanh(pre.astype(tanh_dtype)).astype(od)

    h = layer(params["w1"], params["b1"], x.astype(jnp.float32))
    h = layer(params["w2"], params["b2"], h)
    h = layer(params["w3"], params["b3"], h)
    return (jnp.dot(h, params["w4"].astype(od).T,
                    preferred_element_type=jnp.float32)
            + params["b4"].astype(jnp.float32).T)


def prepare_policy_params(params, operand_dtype=jnp.bfloat16):
    """Pre-cast weights ONCE outside the per-call rollout path."""
    out = dict(params)
    for k in ("w1", "w2", "w3", "w4"):
        out[k] = params[k].astype(operand_dtype)
    for k in ("b1", "b2", "b3", "b4"):
        out[k] = params[k].astype(jnp.float32)
    return out


def policy_forward(x, params, *, operand_dtype=jnp.bfloat16,
                   force_pallas=False, config=None):
    """Policy forward pass.

    x: (N, num_inputs) array.
    params: w1..w4 as (out, in), b1..b4 as (out, 1), logstd as (1, num_outputs).
            Pass params through prepare_policy_params() to avoid per-call casts.
    operand_dtype: jnp.bfloat16 (fast, MXU-native) or jnp.float32 (exact
            fallback if TRPO ratio/KL stability requires it).
    Returns: (action_mean (N, A) f32, action_logStd (N, A), action_std (1, A))
             action_std shape follows torch.exp(self.logStd) literally.
    """
    n, num_inputs = x.shape
    hidden = params["w1"].shape[0]
    num_outputs = params["w4"].shape[0]
    logstd = params["logstd"]                               # (1, A)

    # Tiny inference batches: Pallas fixed cost dominates -> plain XLA path.
    if n <= 64 and not force_pallas:
        action_mean = _forward_xla(x, params)
        action_log_std = jnp.broadcast_to(logstd, action_mean.shape)
        action_std = jnp.exp(logstd)
        return action_mean, action_log_std, action_std

    cfg = config or _default_config()
    n_pad, tm = _choose_batch_tiling(n, cfg["max_tile"], cfg["min_steps"])
    n_chunks = 2 if tm >= 256 else 1

    # Layout plumbing: cast FIRST, then pad (half the bytes), then put the
    # batch on the lane axis.
    xT = jnp.pad(x.astype(operand_dtype), ((0, n_pad - n), (0, 0))).T  # (I, n_pad)

    cast = lambda a, dt: a if a.dtype == dt else a.astype(dt)
    w1, w2, w3, w4 = (cast(params[k], operand_dtype) for k in ("w1", "w2", "w3", "w4"))
    b1, b2, b3, b4 = (cast(params[k], jnp.float32) for k in ("b1", "b2", "b3", "b4"))

    # Weights / biases: full-shape blocks, constant index map -> VMEM-resident
    # across the batch grid (no re-DMA per step).
    const = lambda shape: pl.BlockSpec(shape, lambda i: (0, 0))
    in_specs = [
        pl.BlockSpec((num_inputs, tm), lambda i: (0, i)),            # xT tile
        const((hidden, num_inputs)), const((hidden, 1)),
        const((hidden, hidden)),     const((hidden, 1)),
        const((hidden, hidden)),     const((hidden, 1)),
        const((num_outputs, hidden)), const((num_outputs, 1)),
    ]

    kernel = functools.partial(_policy_mlp_kernel,
                               n_chunks=n_chunks,
                               tanh_dtype=cfg["tanh_dtype"])

    mean_t = pl.pallas_call(
        kernel,
        out_shape=jax.ShapeDtypeStruct((num_outputs, n_pad), jnp.float32),
        grid=(n_pad // tm,),
        in_specs=in_specs,
        out_specs=pl.BlockSpec((num_outputs, tm), lambda i: (0, i)),
        compiler_params=pltpu.CompilerParams(
            dimension_semantics=("parallel",)),
    )(xT, w1, b1, w2, b2, w3, b3, w4, b4)

    # NOTE: for large training batches, keep this transpose+slice inside the
    # same jit as the consumer (log-prob / KL math) so XLA fuses it, or
    # consume the (A, N) layout directly.
    action_mean = mean_t[:, :n].T                            # (N, A) f32
    action_log_std = jnp.broadcast_to(logstd, action_mean.shape)
    action_std = jnp.exp(logstd)                             # (1, A), as in torch
    return action_mean, action_log_std, action_std


def init_policy_params(key, num_inputs, num_outputs, hidden_size):
    """Synthetic init mimicking nn.Linear (uniform +/- 1/sqrt(fan_in)).
    Weights stored PyTorch-native (out, in); biases (out, 1)."""
    def linear(key, fan_in, fan_out):
        kw, kb = jax.random.split(key)
        bound = 1.0 / jnp.sqrt(jnp.float32(fan_in))
        w = jax.random.uniform(kw, (fan_out, fan_in), jnp.float32, -bound, bound)
        b = jax.random.uniform(kb, (fan_out, 1), jnp.float32, -bound, bound)
        return w, b

    k1, k2, k3, k4 = jax.random.split(key, 4)
    w1, b1 = linear(k1, num_inputs, hidden_size)
    w2, b2 = linear(k2, hidden_size, hidden_size)
    w3, b3 = linear(k3, hidden_size, hidden_size)
    w4, b4 = linear(k4, hidden_size, num_outputs)
    logstd = jnp.zeros((1, num_outputs), jnp.float32)  # nn.Parameter(zeros(1, A))
    return {"w1": w1, "b1": b1, "w2": w2, "b2": b2,
            "w3": w3, "b3": b3, "w4": w4, "b4": b4, "logstd": logstd}


if __name__ == "__main__":
    num_inputs, num_outputs, hidden_size = 16, 8, 32

    key = jax.random.PRNGKey(0)
    kp, kx1, kx2 = jax.random.split(key, 3)
    params = init_policy_params(kp, num_inputs, num_outputs, hidden_size)
    prepped = prepare_policy_params(params)      # bf16 weights cached once
    cfg = _default_config()

    def run_and_check(batch, kx, force_pallas):
        x = jax.random.normal(kx, (batch, num_inputs), jnp.float32)
        mean, log_std, std = policy_forward(x, prepped,
                                            force_pallas=force_pallas,
                                            config=cfg)
        jax.block_until_ready((mean, log_std, std))

        assert mean.shape == (batch, num_outputs)
        assert log_std.shape == (batch, num_outputs)
        assert std.shape == (1, num_outputs)

        # Tight check: reference with the exact same dtype recipe.
        ref = _forward_reference(x, params, jnp.bfloat16, cfg["tanh_dtype"])
        err = float(jnp.abs(mean - ref).max())
        assert jnp.allclose(mean, ref, atol=1e-2), err

        # Loose check: full-f32 forward (semantics of the torch module).
        ref_f32 = _forward_xla(x, params)
        err32 = float(jnp.abs(mean - ref_f32).max())
        assert jnp.allclose(mean, ref_f32, atol=5e-2), err32

        assert jnp.allclose(log_std,
                            jnp.broadcast_to(params["logstd"], mean.shape))
        assert jnp.allclose(std, jnp.exp(params["logstd"]))

    # Small batch: force the Pallas path (single 128-lane tile).
    run_and_check(8, kx1, force_pallas=True)
    # Medium batch: auto-dispatch -> Pallas with 128-only padding, multi-chunk
    # (and 2 parallel grid steps on v7x).
    run_and_check(200, kx2, force_pallas=False)

    print("KERNEL_OK")
</pallas_src>

<mosaic_0001>
module attributes {stable_mosaic.version = 11 : i64} {
  func.func @_policy_mlp_kernel(%arg0: i32, %arg1: memref<16x128xbf16, #tpu.memory_space<vmem>>, %arg2: memref<32x16xbf16, #tpu.memory_space<vmem>>, %arg3: memref<32x1xf32, #tpu.memory_space<vmem>>, %arg4: memref<32x32xbf16, #tpu.memory_space<vmem>>, %arg5: memref<32x1xf32, #tpu.memory_space<vmem>>, %arg6: memref<32x32xbf16, #tpu.memory_space<vmem>>, %arg7: memref<32x1xf32, #tpu.memory_space<vmem>>, %arg8: memref<8x32xbf16, #tpu.memory_space<vmem>>, %arg9: memref<8x1xf32, #tpu.memory_space<vmem>>, %arg10: memref<8x128xf32, #tpu.memory_space<vmem>>) attributes {dimension_semantics = [#tpu.dimension_semantics<parallel>], iteration_bounds = array<i64: 1>, scalar_prefetch = 0 : i64, scratch_operands = 0 : i64, tpu.core_type = #tpu.core_type<tc>, window_params = [{transform_indices = @transform_0, window_bounds = array<i64: 16, 128>}, {pipeline_mode = #tpu.pipeline_mode<synchronous>, transform_indices = @transform_1, window_bounds = array<i64: 32, 16>}, {pipeline_mode = #tpu.pipeline_mode<synchronous>, transform_indices = @transform_2, window_bounds = array<i64: 32, 1>}, {pipeline_mode = #tpu.pipeline_mode<synchronous>, transform_indices = @transform_3, window_bounds = array<i64: 32, 32>}, {pipeline_mode = #tpu.pipeline_mode<synchronous>, transform_indices = @transform_4, window_bounds = array<i64: 32, 1>}, {pipeline_mode = #tpu.pipeline_mode<synchronous>, transform_indices = @transform_5, window_bounds = array<i64: 32, 32>}, {pipeline_mode = #tpu.pipeline_mode<synchronous>, transform_indices = @transform_6, window_bounds = array<i64: 32, 1>}, {pipeline_mode = #tpu.pipeline_mode<synchronous>, transform_indices = @transform_7, window_bounds = array<i64: 8, 32>}, {pipeline_mode = #tpu.pipeline_mode<synchronous>, transform_indices = @transform_8, window_bounds = array<i64: 8, 1>}, {transform_indices = @transform_9, window_bounds = array<i64: 8, 128>}]} {
    %c0 = arith.constant 0 : index
    %c0_0 = arith.constant 0 : index
    %0 = vector.load %arg2[%c0, %c0_0] : memref<32x16xbf16, #tpu.memory_space<vmem>>, vector<32x16xbf16>
    %c0_1 = arith.constant 0 : index
    %c0_2 = arith.constant 0 : index
    %1 = vector.load %arg3[%c0_1, %c0_2] : memref<32x1xf32, #tpu.memory_space<vmem>>, vector<32x1xf32>
    %c0_3 = arith.constant 0 : index
    %c0_4 = arith.constant 0 : index
    %2 = vector.load %arg4[%c0_3, %c0_4] : memref<32x32xbf16, #tpu.memory_space<vmem>>, vector<32x32xbf16>
    %c0_5 = arith.constant 0 : index
    %c0_6 = arith.constant 0 : index
    %3 = vector.load %arg5[%c0_5, %c0_6] : memref<32x1xf32, #tpu.memory_space<vmem>>, vector<32x1xf32>
    %c0_7 = arith.constant 0 : index
    %c0_8 = arith.constant 0 : index
    %4 = vector.load %arg6[%c0_7, %c0_8] : memref<32x32xbf16, #tpu.memory_space<vmem>>, vector<32x32xbf16>
    %c0_9 = arith.constant 0 : index
    %c0_10 = arith.constant 0 : index
    %5 = vector.load %arg7[%c0_9, %c0_10] : memref<32x1xf32, #tpu.memory_space<vmem>>, vector<32x1xf32>
    %c0_11 = arith.constant 0 : index
    %c0_12 = arith.constant 0 : index
    %6 = vector.load %arg8[%c0_11, %c0_12] : memref<8x32xbf16, #tpu.memory_space<vmem>>, vector<8x32xbf16>
    %c0_13 = arith.constant 0 : index
    %c0_14 = arith.constant 0 : index
    %7 = vector.load %arg9[%c0_13, %c0_14] : memref<8x1xf32, #tpu.memory_space<vmem>>, vector<8x1xf32>
    %c0_15 = arith.constant 0 : index
    %c0_16 = arith.constant 0 : index
    %8 = vector.load %arg1[%c0_15, %c0_16] : memref<16x128xbf16, #tpu.memory_space<vmem>>, vector<16x128xbf16>
    %cst = arith.constant dense<0.000000e+00> : vector<32x128xf32>
    %9 = tpu.matmul %0, %8, %cst {dimension_numbers = #tpu.dot_dimension_numbers<[1], [0], [0], [1], [0, 0, 1, 1], [], []>} : vector<32x16xbf16>, vector<16x128xbf16>, vector<32x128xf32> -> vector<32x128xf32>
    %10 = vector.broadcast %1 : vector<32x1xf32> to vector<32x128xf32>
    %11 = arith.addf %9, %10 : vector<32x128xf32>
    %12 = math.tanh %11 : vector<32x128xf32>
    %13 = arith.truncf %12 : vector<32x128xf32> to vector<32x128xbf16>
    %cst_17 = arith.constant dense<0.000000e+00> : vector<32x128xf32>
    %14 = tpu.matmul %2, %13, %cst_17 {dimension_numbers = #tpu.dot_dimension_numbers<[1], [0], [0], [1], [0, 0, 1, 1], [], []>} : vector<32x32xbf16>, vector<32x128xbf16>, vector<32x128xf32> -> vector<32x128xf32>
    %15 = vector.broadcast %3 : vector<32x1xf32> to vector<32x128xf32>
    %16 = arith.addf %14, %15 : vector<32x128xf32>
    %17 = math.tanh %16 : vector<32x128xf32>
    %18 = arith.truncf %17 : vector<32x128xf32> to vector<32x128xbf16>
    %cst_18 = arith.constant dense<0.000000e+00> : vector<32x128xf32>
    %19 = tpu.matmul %4, %18, %cst_18 {dimension_numbers = #tpu.dot_dimension_numbers<[1], [0], [0], [1], [0, 0, 1, 1], [], []>} : vector<32x32xbf16>, vector<32x128xbf16>, vector<32x128xf32> -> vector<32x128xf32>
    %20 = vector.broadcast %5 : vector<32x1xf32> to vector<32x128xf32>
    %21 = arith.addf %19, %20 : vector<32x128xf32>
    %22 = math.tanh %21 : vector<32x128xf32>
    %23 = arith.truncf %22 : vector<32x128xf32> to vector<32x128xbf16>
    %cst_19 = arith.constant dense<0.000000e+00> : vector<8x128xf32>
    %24 = tpu.matmul %6, %23, %cst_19 {dimension_numbers = #tpu.dot_dimension_numbers<[1], [0], [0], [1], [0, 0, 1, 1], [], []>} : vector<8x32xbf16>, vector<32x128xbf16>, vector<8x128xf32> -> vector<8x128xf32>
    %25 = vector.broadcast %7 : vector<8x1xf32> to vector<8x128xf32>
    %26 = arith.addf %24, %25 : vector<8x128xf32>
    %c0_20 = arith.constant 0 : index
    %c0_21 = arith.constant 0 : index
    %27 = vector.load %arg10[%c0_20, %c0_21] : memref<8x128xf32, #tpu.memory_space<vmem>>, vector<8x128xf32>
    tpu.vector_store %arg10[%c0_20, %c0_21], %26 {strides = array<i32>} : memref<8x128xf32, #tpu.memory_space<vmem>>, vector<8x128xf32>,
    return
  }
  func.func @transform_0(%arg0: i32) -> (i32, i32) {
    %c0_i32 = arith.constant 0 : i32
    %c0_i32_0 = arith.constant 0 : i32
    return %c0_i32, %arg0 : i32, i32
  }
  func.func @transform_1(%arg0: i32) -> (i32, i32) {
    %c0_i32 = arith.constant 0 : i32
    %c0_i32_0 = arith.constant 0 : i32
    %c0_i32_1 = arith.constant 0 : i32
    return %c0_i32, %c0_i32_0 : i32, i32
  }
  func.func @transform_2(%arg0: i32) -> (i32, i32) {
    %c0_i32 = arith.constant 0 : i32
    %c0_i32_0 = arith.constant 0 : i32
    %c0_i32_1 = arith.constant 0 : i32
    return %c0_i32, %c0_i32_0 : i32, i32
  }
  func.func @transform_3(%arg0: i32) -> (i32, i32) {
    %c0_i32 = arith.constant 0 : i32
    %c0_i32_0 = arith.constant 0 : i32
    %c0_i32_1 = arith.constant 0 : i32
    return %c0_i32, %c0_i32_0 : i32, i32
  }
  func.func @transform_4(%arg0: i32) -> (i32, i32) {
    %c0_i32 = arith.constant 0 : i32
    %c0_i32_0 = arith.constant 0 : i32
    %c0_i32_1 = arith.constant 0 : i32
    return %c0_i32, %c0_i32_0 : i32, i32
  }
  func.func @transform_5(%arg0: i32) -> (i32, i32) {
    %c0_i32 = arith.constant 0 : i32
    %c0_i32_0 = arith.constant 0 : i32
    %c0_i32_1 = arith.constant 0 : i32
    return %c0_i32, %c0_i32_0 : i32, i32
  }
  func.func @transform_6(%arg0: i32) -> (i32, i32) {
    %c0_i32 = arith.constant 0 : i32
    %c0_i32_0 = arith.constant 0 : i32
    %c0_i32_1 = arith.constant 0 : i32
    return %c0_i32, %c0_i32_0 : i32, i32
  }
  func.func @transform_7(%arg0: i32) -> (i32, i32) {
    %c0_i32 = arith.constant 0 : i32
    %c0_i32_0 = arith.constant 0 : i32
    %c0_i32_1 = arith.constant 0 : i32
    return %c0_i32, %c0_i32_0 : i32, i32
  }
  func.func @transform_8(%arg0: i32) -> (i32, i32) {
    %c0_i32 = arith.constant 0 : i32
    %c0_i32_0 = arith.constant 0 : i32
    %c0_i32_1 = arith.constant 0 : i32
    return %c0_i32, %c0_i32_0 : i32, i32
  }
  func.func @transform_9(%arg0: i32) -> (i32, i32) {
    %c0_i32 = arith.constant 0 : i32
    %c0_i32_0 = arith.constant 0 : i32
    return %c0_i32, %arg0 : i32, i32
  }
}

</mosaic_0001>

<bundles_post_ra>
// kernel: tpu_custom_call.1
= control target key start
LH: loop header
LB: loop body
LE: loop exit
PB: predicated region body
PF: predicated region fallthrough
CT: control target
= control target key end

     0   :  { %v388_v2 = vmov 0   ;;  %vm98_vm0 = vcmask 130048   ;;  %s511_s0 = inlined_call_operand.vmem [shape: bf16[16,128], index: 0, kind: input, shape index: {}]   ;;  %s512_s1 = inlined_call_operand.vmem [shape: bf16[32,16], index: 1, kind: input, shape index: {}]   ;;  %s513_s2 = inlined_call_operand.vmem [shape: f32[32,1], index: 2, kind: input, shape index: {}]   ;;  %s514_s3 = inlined_call_operand.vmem [shape: bf16[32,32], index: 3, kind: input, shape index: {}]   ;;  %s515_s4 = inlined_call_operand.vmem [shape: f32[32,1], index: 4, kind: input, shape index: {}]   ;;  %s516_s5 = inlined_call_operand.vmem [shape: bf16[32,32], index: 5, kind: input, shape index: {}]   ;;  %s517_s6 = inlined_call_operand.vmem [shape: f32[32,1], index: 6, kind: input, shape index: {}]   ;;  %s518_s7 = inlined_call_operand.vmem [shape: bf16[8,32], index: 7, kind: input, shape index: {}]   ;;  %s519_s8 = inlined_call_operand.vmem [shape: f32[8,1], index: 8, kind: input, shape index: {}]   ;;  %s520_s9 = inlined_call_operand.hbm [shape: f32[8,128], index: 9, kind: output, shape index: {}]  }
   0x1   :  { %v40_v0 = vld [vmem:[%s513_s2 + $0x10] sm:$0xff]  ;;  %v332_v1 = vld [vmem:[%s511_s0] sm:$0xff]  ;;  %335 = vset.pattern.permute.xlu0 %v388_v2  ;;  %336 = vset.pattern.permute.xlu1 %v388_v2 }
   0x2   :  { %v326_v3 = vld [vmem:[%s512_s1] sm:$0xff]  ;;  %74 = vperm.xlu0 %335, %v40_v0   ;;  %112 = vmatpush.bf16.msra.mxu0 %v332_v1 }
   0x3   :  { %v38_v4 = vld [vmem:[%s513_s2] sm:$0xff]  ;;  %337 = vset.pattern.permute.xlu2 %v388_v2 }
   0x4   :  { %64 = vperm.xlu1 %336, %v38_v4  }
   0x5   :  { %14 = vsyncpa [#allocation3], 0  ;;  %303 = vmatmul.msk.bf16.vlgmr.msra.gmra.mxu0 %vm98_vm0, %v326_v3  ;;  %v41_v5 = vld [vmem:[%s513_s2 + $0x18] sm:$0xff]  ;;  %v39_v6 = vld [vmem:[%s513_s2 + $0x8] sm:$0xff]  ;;  %vm160_vm1 = vcmask 261120   ;;  %s389_s21 = smov [#allocation2]  }
   0x6   :  { %v46_v7 = vld [vmem:[%s515_s4] sm:$0xff]  ;;  %v47_v8 = vld [vmem:[%s515_s4 + $0x8] sm:$0xff]  ;;  %v57_v10 = vld [vmem:[%s517_s6 + $0x18] sm:$0xff]  ;;  %s280_s22 = sshll.u32 %s389_s21, 4  ;;  %s282_s25 = sshll.u32 %s520_s9, 4  ;;  %s281_s22 = int_to_ptr.vmem [resolvable:$true] %s280_s22  ;;  %s283_s25 = int_to_ptr.hbm [resolvable:$true] %s282_s25 }
   0x7   :  { %v327_v9 = vld [vmem:[%s512_s1 + $0x8] sm:$0xff]  ;;  %v54_v11 = vld [vmem:[%s517_s6] sm:$0xff]  ;;  %v48_v25 = vld [vmem:[%s515_s4 + $0x10] sm:$0xff] }
   0x8   :  { %v59_v12 = vld [vmem:[%s519_s8] sm:$0xff]  ;;  %142 = vperm.xlu2 %337, %v48_v25   ;;  %v49_v28 = vld [vmem:[%s515_s4 + $0x18] sm:$0xff]  ;;  %v56_v34 = vld [vmem:[%s517_s6 + $0x10] sm:$0xff] }
   0x9   :  { %v328_v33 = vld [vmem:[%s514_s3] sm:$0xff]  ;;  %v55_v35 = vld [vmem:[%s517_s6 + $0x8] sm:$0xff] }
   0xa   :  { %79 = vperm.xlu0 %335, %v41_v5   ;;  %v329_v36 = vld [vmem:[%s514_s3 + $0x8] sm:$0xff]  ;;  %v330_v55 = vld [vmem:[%s516_s5] sm:$0xff] }
   0xb   :  { %v331_v56 = vld [vmem:[%s516_s5 + $0x8] sm:$0xff] }
   0xc   :  { %69 = vperm.xlu1 %336, %v39_v6  }
  0x10   :  { %147 = vperm.xlu2 %337, %v49_v28  }
  0x12   :  { %132 = vperm.xlu0 %335, %v46_v7  }
  0x14   :  { %137 = vperm.xlu1 %336, %v47_v8  }
  0x15   :  { %304 = vmatmul.msk.bf16.gmra.mxu0 %vm98_vm0, %v327_v9 }
  0x18   :  { %204 = vperm.xlu2 %337, %v56_v34  }
  0x1a   :  { %209 = vperm.xlu0 %335, %v57_v10  }
  0x1c   :  { %194 = vperm.xlu1 %336, %v54_v11   ;;  %v58_v11 = vld [vmem:[%s518_s7] sm:$0xf] }
  0x20   :  { %199 = vperm.xlu2 %337, %v55_v35  }
  0x22   :  { %255 = vperm.xlu0 %335, %v59_v12  }
  0x62   :  { %v143_v39 = vpop.permute.xlu2 %142 }
  0x6a   :  { %v148_v43 = vpop.permute.xlu2 %147 }
  0x72   :  { %v205_v59 = vpop.permute.xlu2 %204 }
  0x74   :  { %v75_v15 = vpop.permute.xlu0 %74 }
  0x76   :  { %v65_v16 = vpop.permute.xlu1 %64 }
  0x7a   :  { %v200_v63 = vpop.permute.xlu2 %199 }
  0x7c   :  { %v80_v19 = vpop.permute.xlu0 %79 }
  0x7e   :  { %v70_v20 = vpop.permute.xlu1 %69 }
  0x82   :  { %v114_v13 = vpop.f32.mrf.mxu0 }
  0x83   :  { %v115_v24 = vadd.f32 %v114_v13, %v65_v16 }
  0x84   :  { %v133_v47 = vpop.permute.xlu0 %132 }
  0x86   :  { %v138_v42 = vpop.permute.xlu1 %137 }
  0x8a   :  { %v116_v14 = vpop.f32.mrf.mxu0 }
  0x8b   :  { %v117_v22 = vadd.f32 %v116_v14, %v70_v20 }
  0x8c   :  { %v210_v62 = vpop.permute.xlu0 %209 }
  0x8e   :  { %v195_v3 = vpop.permute.xlu1 %194 }
  0x92   :  { %v119_v17 = vpop.f32.mrf.mxu0 }
  0x93   :  { %v120_v18 = vadd.f32 %v119_v17, %v75_v15 }
  0x94   :  { %v256_v12 = vpop.permute.xlu0 %255 }
  0x95   :  { %338 = vtanh.f32 %v120_v18 }
  0x9a   :  { %v121_v21 = vpop.f32.mrf.mxu0 }
  0x9b   :  { %v122_v23 = vadd.f32 %v121_v21, %v80_v19  ;;  %v339_v26 = vpop.eup %338 }
  0x9d   :  { %340 = vtanh.f32 %v122_v23 }
  0x9e   :  { %342 = vtanh.f32 %v117_v22 }
  0x9f   :  { %344 = vtanh.f32 %v115_v24 }
  0xa3   :  { %v341_v27 = vpop.eup %340 }
  0xa4   :  { %v129_v29 = vpack.c.bf16 %v341_v27, %v339_v26  ;;  %v343_v30 = vpop.eup %342 }
  0xa5   :  { %v345_v31 = vpop.eup %344 }
  0xa6   :  { %173 = vmatpush.bf16.msra.mxu1 %v129_v29  ;;  %v128_v32 = vpack.c.bf16 %v343_v30, %v345_v31 }
  0xaa   :  { %174 = vmatpush.bf16.msra.mxu1 %v128_v32 }
  0xad   :  { %313 = vmatmul.msk.bf16.vlgmr.msra.gmra.mxu1 %vm160_vm1, %v328_v33 }
  0xbd   :  { %314 = vmatmul.msk.bf16.gmra.mxu1 %vm160_vm1, %v329_v36 }
 0x12a   :  { %v176_v37 = vpop.f32.mrf.mxu1 }
 0x12b   :  { %v177_v48 = vadd.f32 %v176_v37, %v133_v47 }
 0x132   :  { %v178_v38 = vpop.f32.mrf.mxu1 }
 0x133   :  { %v179_v45 = vadd.f32 %v178_v38, %v138_v42 }
 0x13a   :  { %v181_v40 = vpop.f32.mrf.mxu1 }
 0x13b   :  { %v182_v41 = vadd.f32 %v181_v40, %v143_v39 }
 0x13d   :  { %346 = vtanh.f32 %v182_v41 }
 0x142   :  { %v183_v44 = vpop.f32.mrf.mxu1 }
 0x143   :  { %v184_v46 = vadd.f32 %v183_v44, %v148_v43  ;;  %v347_v49 = vpop.eup %346 }
 0x145   :  { %348 = vtanh.f32 %v184_v46 }
 0x146   :  { %350 = vtanh.f32 %v179_v45 }
 0x147   :  { %352 = vtanh.f32 %v177_v48 }
 0x14b   :  { %v349_v50 = vpop.eup %348 }
 0x14c   :  { %v191_v51 = vpack.c.bf16 %v349_v50, %v347_v49  ;;  %v351_v52 = vpop.eup %350 }
 0x14d   :  { %v353_v53 = vpop.eup %352 }
 0x14e   :  { %234 = vmatpush.bf16.msra.mxu2 %v191_v51  ;;  %v190_v54 = vpack.c.bf16 %v351_v52, %v353_v53 }
 0x152   :  { %235 = vmatpush.bf16.msra.mxu2 %v190_v54 }
 0x155   :  { %323 = vmatmul.msk.bf16.vlgmr.msra.gmra.mxu2 %vm160_vm1, %v330_v55 }
 0x165   :  { %324 = vmatmul.msk.bf16.gmra.mxu2 %vm160_vm1, %v331_v56 }
 0x1d8   :  { %v237_v57 = vpop.f32.mrf.mxu2 }
 0x1d9   :  { %v238_v4 = vadd.f32 %v237_v57, %v195_v3 }
 0x1e0   :  { %v239_v58 = vpop.f32.mrf.mxu2 }
 0x1e1   :  { %v240_v1 = vadd.f32 %v239_v58, %v200_v63 }
 0x1e8   :  { %v242_v60 = vpop.f32.mrf.mxu2 }
 0x1e9   :  { %v243_v61 = vadd.f32 %v242_v60, %v205_v59 }
 0x1eb   :  { %354 = vtanh.f32 %v243_v61 }
 0x1f0   :  { %v244_v0 = vpop.f32.mrf.mxu2 }
 0x1f1   :  { %v245_v2 = vadd.f32 %v244_v0, %v210_v62  ;;  %v355_v5 = vpop.eup %354 }
 0x1f3   :  { %356 = vtanh.f32 %v245_v2 }
 0x1f4   :  { %358 = vtanh.f32 %v240_v1 }
 0x1f5   :  { %360 = vtanh.f32 %v238_v4 }
 0x1f9   :  { %v357_v6 = vpop.eup %356 }
 0x1fa   :  { %v252_v7 = vpack.c.bf16 %v357_v6, %v355_v5  ;;  %v359_v8 = vpop.eup %358 }
 0x1fb   :  { %v361_v9 = vpop.eup %360 }
 0x1fc   :  { %267 = vmatpush.bf16.msra.mxu3 %v252_v7  ;;  %v251_v10 = vpack.c.bf16 %v359_v8, %v361_v9 }
 0x200   :  { %268 = vmatpush.bf16.msra.mxu3 %v251_v10 }
 0x203   :  { %325 = vmatmul.msk.bf16.vlgmr.msra.gmra.mxu3 %vm160_vm1, %v58_v11 }
 0x286   :  { %v270_v13 = vpop.f32.mrf.mxu3 }
 0x287   :  { %v271_v14 = vadd.f32 %v270_v13, %v256_v12 }
 0x289   :  { %274 = vst [vmem:[#allocation2] sm:$0xff] %v271_v14 }
 0x28a   :  { %285 = dma.vmem_to_hbm [thread:$0]  %s281_s22, 128, %s283_s25, [#allocation3]  }
 0x28e   :  { %v272_v15 = vpop.f32.mrf.mxu3 }
 0x28f   :  { %386 = dma.done.wait [#allocation3], 128  }
 0x290   :  { %387 = vsyncadd [#allocation3], 4294967168 }
 0x291   :  { %290 = vsyncpa [#allocation3], 1 }

</bundles_post_ra>
